<compile_context>
chip_gen: v7x
topology: tpu7x:2x2x1
jax: 0.10.0
libtpu: 0.0.40
codegen_flags: <defaults>
</compile_context>

<pallas_src>
import math
import warnings

import jax
import jax.numpy as jnp
from jax.experimental import pallas as pl
from jax.experimental.pallas import tpu as pltpu

_LANES = 128
_TARGET_BLOCK_BYTES = 2 << 20  # ~2 MiB per (row_tile, 128) x-block (4 MiB also fits)


def _drop_path_kernel(scale_ref, x_ref, o_ref):
    # scale_ref: (row_tile, 1) per-row scale in x's dtype (VMEM)
    # x_ref / o_ref: (row_tile, 128) lane/sublane-dense tiles
    o_ref[...] = (x_ref[...] * scale_ref[...]).astype(o_ref.dtype)


def _row_tile(total_rows: int, itemsize: int) -> int:
    # Sublane packing granularity: 8 for 4-byte, 16 for 2-byte, 32 for 1-byte.
    sub = {4: 8, 2: 16, 1: 32}.get(itemsize, 8)
    max_rows = max(sub, (_TARGET_BLOCK_BYTES // (_LANES * itemsize)) // sub * sub)
    rounded = ((total_rows + sub - 1) // sub) * sub
    return min(max_rows, rounded)


def _drop_path_apply_impl(x, scale):
    # x: (B, ...) features; scale: (B,) f32 per-sample scale = mask / keep_prob
    orig_shape = x.shape
    B = orig_shape[0]
    N = math.prod(orig_shape[1:])
    dtype = x.dtype
    itemsize = jnp.dtype(dtype).itemsize

    x2 = x.reshape(B, N)
    n_pad = (-N) % _LANES
    if n_pad:
        # TODO(synk): this pad + final slice costs two extra HBM passes; it is
        # only hit when C*H*W is not a multiple of 128 (atypical for Segformer).
        x2 = jnp.pad(x2, ((0, 0), (0, n_pad)))
    n_lanes = N + n_pad
    rows_per_sample = n_lanes // _LANES
    total_rows = B * rows_per_sample

    # Flat lane-dense slab: every vreg fully occupied, unmasked stores.
    x_rows = x2.reshape(total_rows, _LANES)
    # Per-row scale column in x's dtype (keeps bf16 tiles in native width).
    scale_rows = jnp.repeat(scale.astype(dtype), rows_per_sample).reshape(total_rows, 1)

    row_tile = _row_tile(total_rows, itemsize)
    grid = (pl.cdiv(total_rows, row_tile),)  # partial last block handled by Pallas

    out_rows = pl.pallas_call(
        _drop_path_kernel,
        out_shape=jax.ShapeDtypeStruct((total_rows, _LANES), dtype),
        grid=grid,
        in_specs=[
            pl.BlockSpec((row_tile, 1), lambda i: (i, 0)),        # per-row scale
            pl.BlockSpec((row_tile, _LANES), lambda i: (i, 0)),   # feature tile
        ],
        out_specs=pl.BlockSpec((row_tile, _LANES), lambda i: (i, 0)),
        # write the result in place over x (x is donated by the jit wrapper)
        input_output_aliases={1: 0},
        compiler_params=pltpu.CompilerParams(
            # 1-D parallel grid -> even megacore split on v7x regardless of B.
            dimension_semantics=("parallel",),
            # headroom for double-buffered in+out+scale blocks (covers v5e's
            # 16 MiB default scoped VMEM if blocks are grown to 4 MiB).
            vmem_limit_bytes=32 * 1024 * 1024,
        ),
    )(scale_rows, x_rows)

    out2 = out_rows.reshape(B, n_lanes)
    if n_pad:
        out2 = out2[:, :N]
    return out2.reshape(orig_shape)


# x (arg 0) is donated so the pallas-level input/output aliasing never forces a
# defensive copy; callers must not reuse x's device buffer after a training call.
_drop_path_apply = jax.jit(_drop_path_apply_impl, donate_argnums=(0,))


def segformer_drop_path(x, drop_prob=None, training=False, key=None):
    """JAX/Pallas equivalent of SegformerDropPath.forward."""
    if drop_prob is None or drop_prob == 0.0 or not training:
        return x
    if key is None:
        raise ValueError("key is required when training with drop_prob > 0")
    keep_prob = 1.0 - drop_prob
    B = x.shape[0]
    # per-sample mask: floor(keep_prob + U[0,1)) ~ Bernoulli(keep_prob).
    # u is drawn in f32 regardless of x.dtype to avoid keep-rate bias for bf16/fp16.
    u = jax.random.uniform(key, (B,), dtype=jnp.float32)
    random_tensor = jnp.floor(keep_prob + u)
    scale = (random_tensor / keep_prob).astype(jnp.float32)
    with warnings.catch_warnings():
        # Scoped to this call only: the warning is benign here (it fires iff the
        # rare lane-padding path prevents XLA from reusing x's donated buffer —
        # a perf signal, not a correctness issue).
        warnings.filterwarnings(
            "ignore", message="Some donated buffers were not usable")
        return _drop_path_apply(x, scale)


if __name__ == "__main__":
    key = jax.random.PRNGKey(0)
    k_x, k_mask = jax.random.split(key)

    B, C, H, W = 2, 4, 16, 16            # small NCHW input like the module expects
    x = jax.random.normal(k_x, (B, C, H, W), dtype=jnp.float32)
    drop_prob = 0.25
    keep_prob = 1.0 - drop_prob

    # Reference (plain JAX, same RNG as the kernel path).  Computed BEFORE the
    # training call because x's device buffer is donated to the kernel.
    u = jax.random.uniform(k_mask, (B,), dtype=jnp.float32)
    mask = jnp.floor(keep_prob + u)
    expected = jax.block_until_ready(x / keep_prob * mask.reshape(B, 1, 1, 1))

    # eval path: identity (checked before x is donated)
    out_eval = segformer_drop_path(x, drop_prob=drop_prob, training=False)
    assert jnp.allclose(out_eval, x), "eval-path should be identity"

    # training path: stochastic depth applied by the Pallas kernel (donates x)
    out_train = segformer_drop_path(x, drop_prob=drop_prob, training=True, key=k_mask)
    out_train = jax.block_until_ready(out_train)
    assert jnp.allclose(out_train, expected, atol=1e-6), "training-path mismatch"

    print("KERNEL_OK")
</pallas_src>

<mosaic_0001>
module attributes {stable_mosaic.version = 11 : i64} {
  func.func @_drop_path_kernel(%arg0: i32, %arg1: memref<16x1xf32, #tpu.memory_space<vmem>>, %arg2: memref<16x128xf32, #tpu.memory_space<vmem>>, %arg3: memref<16x128xf32, #tpu.memory_space<vmem>>) attributes {dimension_semantics = [#tpu.dimension_semantics<parallel>], iteration_bounds = array<i64: 1>, scalar_prefetch = 0 : i64, scratch_operands = 0 : i64, tpu.core_type = #tpu.core_type<tc>, window_params = [{transform_indices = @transform_0, window_bounds = array<i64: 16, 1>}, {transform_indices = @transform_1, window_bounds = array<i64: 16, 128>}, {transform_indices = @transform_2, window_bounds = array<i64: 16, 128>}]} {
    %c0 = arith.constant 0 : index
    %c0_0 = arith.constant 0 : index
    %0 = vector.load %arg2[%c0, %c0_0] : memref<16x128xf32, #tpu.memory_space<vmem>>, vector<16x128xf32>
    %c0_1 = arith.constant 0 : index
    %c0_2 = arith.constant 0 : index
    %1 = vector.load %arg1[%c0_1, %c0_2] : memref<16x1xf32, #tpu.memory_space<vmem>>, vector<16x1xf32>
    %2 = vector.broadcast %1 : vector<16x1xf32> to vector<16x128xf32>
    %3 = arith.mulf %0, %2 : vector<16x128xf32>
    %c0_3 = arith.constant 0 : index
    %c0_4 = arith.constant 0 : index
    %4 = vector.load %arg3[%c0_3, %c0_4] : memref<16x128xf32, #tpu.memory_space<vmem>>, vector<16x128xf32>
    tpu.vector_store %arg3[%c0_3, %c0_4], %3 {strides = array<i32>} : memref<16x128xf32, #tpu.memory_space<vmem>>, vector<16x128xf32>,
    return
  }
  func.func @transform_0(%arg0: i32) -> (i32, i32) {
    %c0_i32 = arith.constant 0 : i32
    %c0_i32_0 = arith.constant 0 : i32
    return %arg0, %c0_i32 : i32, i32
  }
  func.func @transform_1(%arg0: i32) -> (i32, i32) {
    %c0_i32 = arith.constant 0 : i32
    %c0_i32_0 = arith.constant 0 : i32
    return %arg0, %c0_i32 : i32, i32
  }
  func.func @transform_2(%arg0: i32) -> (i32, i32) {
    %c0_i32 = arith.constant 0 : i32
    %c0_i32_0 = arith.constant 0 : i32
    return %arg0, %c0_i32 : i32, i32
  }
}

</mosaic_0001>

<bundles_post_ra>
// kernel: _drop_path_apply_impl.1
= control target key start
LH: loop header
LB: loop body
LE: loop exit
PB: predicated region body
PF: predicated region fallthrough
CT: control target
= control target key end

     0   :  { %v35_v0 = vmov 0   ;;  %s69_s0 = inlined_call_operand.vmem [shape: f32[16,1], index: 0, kind: input, shape index: {}]   ;;  %s70_s1 = inlined_call_operand.vmem [shape: f32[16,128], index: 1, kind: input, shape index: {}, may-alias: {1,2}]   ;;  %s71_s2 = inlined_call_operand.vmem [shape: f32[16,128], index: 2, kind: output, shape index: {}, may-alias: {1,2}]  }
   0x1   :  { %34 = vset.pattern.permute.xlu0 %v35_v0  ;;  %v13_v1 = vld [vmem:[%s69_s0] sm:$0xff]  ;;  %v14_v2 = vld [vmem:[%s69_s0 + $0x8] sm:$0xff] }
   0x2   :  { %17 = vperm.xlu0 %34, %v13_v1   ;;  %v11_v3 = vld [vmem:[%s70_s1] sm:$0xff]  ;;  %v12_v6 = vld [vmem:[%s70_s1 + $0x8] sm:$0xff] }
   0x6   :  { %22 = vperm.xlu0 %34, %v14_v2  }
  0x81   :  { %v18_v4 = vpop.permute.xlu0 %17 }
  0x82   :  { %v25_v5 = vmul.f32 %v18_v4, %v11_v3 }
  0x84   :  { %27 = vst [vmem:[%s71_s2] sm:$0xff] %v25_v5 }
  0x85   :  { %v23_v7 = vpop.permute.xlu0 %22 }
  0x86   :  { %v26_v8 = vmul.f32 %v23_v7, %v12_v6 }
  0x88   :  { %28 = vst [vmem:[%s71_s2 + $0x8] sm:$0xff] %v26_v8 }

</bundles_post_ra>
